<compile_context>
chip_gen: v7x
topology: tpu7x:2x2x1
jax: 0.10.0
libtpu: 0.0.40
codegen_flags: <defaults>
</compile_context>

<pallas_src>
import functools

import jax
import jax.numpy as jnp
import numpy as np
from jax.experimental import pallas as pl
from jax.experimental.pallas import tpu as pltpu

C_IN = 29          # real input features (kept un-padded, K of the x-fed dots)
H1 = 256           # linear1 out
H2 = 256           # linear2 out
NUM_CLASSES = 2    # linear3 out
CLS_PAD = 128      # class-group width for in-kernel compute (lane-dense slices)
OUT_PAD = 8        # class width of the HBM output array (small writeback)


def _round_up(a, m):
    return (a + m - 1) // m * m


def net_kernel(x_ref, wx_ref, wh1_ref, wh2_ref, b_ref, out_ref):
    # x tile: (bt, 29) f32 in VMEM -> bf16 operands for the MXU.
    x = x_ref[...].astype(jnp.bfloat16)

    # All x-fed blocks in one dot: [W1 | W2a | W3a_pad], plus all biases
    # ([b1 | b2 | b3_pad]).  Padded class lanes of b3 carry -1e30 (softmax mask).
    xw = jnp.dot(x, wx_ref[...], preferred_element_type=jnp.float32) + b_ref[...]

    # ---- linear1 + relu --------------------------------------------------
    h1 = jnp.maximum(xw[:, 0:H1], 0.0)                          # (bt, 256) f32
    h1b = h1.astype(jnp.bfloat16)

    # h1-fed blocks in one dot: [W2b | W3b_pad]
    hw1 = jnp.dot(h1b, wh1_ref[...], preferred_element_type=jnp.float32)

    # ---- linear2(cat(x, h1)) + relu --------------------------------------
    h2 = jnp.maximum(xw[:, H1:H1 + H2] + hw1[:, 0:H2], 0.0)     # (bt, 256) f32
    h2b = h2.astype(jnp.bfloat16)

    # ---- linear3(cat(x, h1, h2)) -----------------------------------------
    logits = (xw[:, H1 + H2:H1 + H2 + CLS_PAD]
              + hw1[:, H2:H2 + CLS_PAD]
              + jnp.dot(h2b, wh2_ref[...], preferred_element_type=jnp.float32))

    # ---- softmax (padded lanes hold -1e30 -> exp underflows to 0) ---------
    m = jnp.max(logits, axis=-1, keepdims=True)
    e = jnp.exp(logits - m)
    s = jnp.sum(e, axis=-1, keepdims=True)
    probs = e / s                                               # exact divide

    out_ref[...] = probs[:, :OUT_PAD]                           # (bt, 8) f32


def prepare_params(torch_params):
    """Convert torch-layout (out,in) weights into kernel-layout bf16 blocks."""
    w1, b1, w2, b2, w3, b3 = torch_params
    w1 = w1.T                       # (29, 256)
    w2 = w2.T                       # (285, 256)
    w3 = w3.T                       # (541, 2)

    w2a, w2b = w2[:C_IN], w2[C_IN:]                        # (29,256), (256,256)
    w3a, w3b, w3c = w3[:C_IN], w3[C_IN:C_IN + H1], w3[C_IN + H1:]

    def pad_cls(w):                 # 2 -> 128 output lanes, zero-filled
        return jnp.pad(w, ((0, 0), (0, CLS_PAD - w.shape[1])))

    w3a, w3b, w3c = pad_cls(w3a), pad_cls(w3b), pad_cls(w3c)

    wx = jnp.concatenate([w1, w2a, w3a], axis=1).astype(jnp.bfloat16)   # (29, 640)
    wh1 = jnp.concatenate([w2b, w3b], axis=1).astype(jnp.bfloat16)      # (256, 384)
    wh2 = w3c.astype(jnp.bfloat16)                                      # (256, 128)

    # Bias for all three layers; padded class lanes get -1e30 so padded logits
    # are masked without any in-kernel iota/where.
    b3p = jnp.full((CLS_PAD,), -1e30, jnp.float32).at[:NUM_CLASSES].set(b3)
    b_all = jnp.concatenate([b1.astype(jnp.float32),
                             b2.astype(jnp.float32),
                             b3p]).reshape(1, -1)                        # (1, 640)
    return (wx, wh1, wh2, b_all)


@functools.partial(jax.jit, static_argnames=("b_tile",))
def net_forward(x, params, b_tile=512):
    wx, wh1, wh2, b_all = params
    B, C = x.shape
    assert C == C_IN, "linear1 expects 29 input features"

    # Batch tile: large enough to amortize grid-step overhead, split so the
    # grid has >= 2 steps when possible (v7x dual-TC sharding).
    bt = min(b_tile, _round_up(B, 8))
    if pl.cdiv(_round_up(B, 8), bt) < 2 and bt >= 16:
        bt = _round_up(bt // 2, 8)
    B_pad = _round_up(B, bt)

    xp = x if B_pad == B else jnp.pad(x, ((0, B_pad - B), (0, 0)))

    def full_spec(p):
        nd = p.ndim
        return pl.BlockSpec(p.shape, lambda i, _nd=nd: (0,) * _nd)

    out = pl.pallas_call(
        net_kernel,
        out_shape=jax.ShapeDtypeStruct((B_pad, OUT_PAD), jnp.float32),
        grid_spec=pltpu.PrefetchScalarGridSpec(
            num_scalar_prefetch=0,
            grid=(B_pad // bt,),
            in_specs=[pl.BlockSpec((bt, C_IN), lambda i: (i, 0)),
                      full_spec(wx), full_spec(wh1), full_spec(wh2),
                      full_spec(b_all)],
            out_specs=pl.BlockSpec((bt, OUT_PAD), lambda i: (i, 0)),
        ),
        compiler_params=pltpu.CompilerParams(
            dimension_semantics=("parallel",)),
    )(xp, wx, wh1, wh2, b_all)

    return out[:B, :NUM_CLASSES]


def net_reference(x, torch_params):
    """Pure-JAX f32 reference matching the torch forward."""
    w1, b1, w2, b2, w3, b3 = torch_params
    h1 = jax.nn.relu(x @ w1.T + b1)
    h2 = jax.nn.relu(jnp.concatenate([x, h1], axis=1) @ w2.T + b2)
    logits = jnp.concatenate([x, h1, h2], axis=1) @ w3.T + b3
    return jax.nn.softmax(logits, axis=-1)


def init_params(key):
    """Torch-layout params: weights (out, in), biases (out,)."""
    ks = jax.random.split(key, 6)

    def w(k, o, i):
        return jax.random.normal(k, (o, i), jnp.float32) / np.sqrt(i)

    def b(k, o):
        return jax.random.normal(k, (o,), jnp.float32) * 0.01

    w1 = w(ks[0], H1, C_IN);                     b1 = b(ks[1], H1)
    w2 = w(ks[2], H2, C_IN + H1);                b2 = b(ks[3], H2)
    w3 = w(ks[4], NUM_CLASSES, C_IN + H1 + H2);  b3 = b(ks[5], NUM_CLASSES)
    return (w1, b1, w2, b2, w3, b3)


if __name__ == "__main__":
    key = jax.random.PRNGKey(0)
    pkey, xkey = jax.random.split(key)

    torch_params = init_params(pkey)
    params = prepare_params(torch_params)

    B = 64
    x = jax.random.normal(xkey, (B, C_IN), jnp.float32)

    out = jax.block_until_ready(net_forward(x, params))
    assert out.shape == (B, NUM_CLASSES)

    # exact softmax normalization -> rows sum to 1 up to f32 rounding
    np.testing.assert_allclose(np.asarray(out.sum(axis=1)), 1.0, atol=1e-4)

    # match the f32 reference (bf16 matmul operands => ~1e-2 scale tolerance)
    ref = np.asarray(net_reference(x, torch_params))
    np.testing.assert_allclose(np.asarray(out), ref, atol=3e-2, rtol=0)

    # non-multiple batch exercises the padded-batch path
    x2 = jax.random.normal(jax.random.PRNGKey(1), (5, C_IN), jnp.float32)
    out2 = jax.block_until_ready(net_forward(x2, params))
    ref2 = np.asarray(net_reference(x2, torch_params))
    np.testing.assert_allclose(np.asarray(out2), ref2, atol=3e-2, rtol=0)

    print("KERNEL_OK")
</pallas_src>

<mosaic_0001>
module attributes {stable_mosaic.version = 11 : i64} {
  func.func @net_kernel(%arg0: i32, %arg1: memref<32x29xf32, #tpu.memory_space<vmem>>, %arg2: memref<29x640xbf16, #tpu.memory_space<vmem>>, %arg3: memref<256x384xbf16, #tpu.memory_space<vmem>>, %arg4: memref<256x128xbf16, #tpu.memory_space<vmem>>, %arg5: memref<1x640xf32, #tpu.memory_space<vmem>>, %arg6: memref<32x8xf32, #tpu.memory_space<vmem>>) attributes {dimension_semantics = [#tpu.dimension_semantics<parallel>], iteration_bounds = array<i64: 2>, scalar_prefetch = 0 : i64, scratch_operands = 0 : i64, tpu.core_type = #tpu.core_type<tc>, window_params = [{transform_indices = @transform_0, window_bounds = array<i64: 32, 29>}, {pipeline_mode = #tpu.pipeline_mode<synchronous>, transform_indices = @transform_1, window_bounds = array<i64: 29, 640>}, {pipeline_mode = #tpu.pipeline_mode<synchronous>, transform_indices = @transform_2, window_bounds = array<i64: 256, 384>}, {pipeline_mode = #tpu.pipeline_mode<synchronous>, transform_indices = @transform_3, window_bounds = array<i64: 256, 128>}, {pipeline_mode = #tpu.pipeline_mode<synchronous>, transform_indices = @transform_4, window_bounds = array<i64: 1, 640>}, {transform_indices = @transform_5, window_bounds = array<i64: 32, 8>}]} {
    %c0 = arith.constant 0 : index
    %c0_0 = arith.constant 0 : index
    %0 = vector.load %arg1[%c0, %c0_0] : memref<32x29xf32, #tpu.memory_space<vmem>>, vector<32x29xf32>
    %1 = arith.truncf %0 : vector<32x29xf32> to vector<32x29xbf16>
    %c0_1 = arith.constant 0 : index
    %c0_2 = arith.constant 0 : index
    %2 = vector.load %arg2[%c0_1, %c0_2] : memref<29x640xbf16, #tpu.memory_space<vmem>>, vector<29x640xbf16>
    %cst = arith.constant dense<0.000000e+00> : vector<32x640xf32>
    %3 = tpu.matmul %1, %2, %cst {dimension_numbers = #tpu.dot_dimension_numbers<[1], [0], [0], [1], [0, 0, 1, 1], [], []>} : vector<32x29xbf16>, vector<29x640xbf16>, vector<32x640xf32> -> vector<32x640xf32>
    %c0_3 = arith.constant 0 : index
    %c0_4 = arith.constant 0 : index
    %4 = vector.load %arg5[%c0_3, %c0_4] : memref<1x640xf32, #tpu.memory_space<vmem>>, vector<1x640xf32>
    %5 = vector.broadcast %4 : vector<1x640xf32> to vector<32x640xf32>
    %6 = arith.addf %3, %5 : vector<32x640xf32>
    %7 = vector.extract_strided_slice %6 {offsets = [0, 0], sizes = [32, 256], strides = [1, 1]} : vector<32x640xf32> to vector<32x256xf32>
    %cst_5 = arith.constant 0.000000e+00 : f32
    %8 = vector.broadcast %cst_5 : f32 to vector<32x256xf32>
    %9 = arith.maximumf %7, %8 : vector<32x256xf32>
    %10 = arith.truncf %9 : vector<32x256xf32> to vector<32x256xbf16>
    %c0_6 = arith.constant 0 : index
    %c0_7 = arith.constant 0 : index
    %11 = vector.load %arg3[%c0_6, %c0_7] : memref<256x384xbf16, #tpu.memory_space<vmem>>, vector<256x384xbf16>
    %cst_8 = arith.constant dense<0.000000e+00> : vector<32x384xf32>
    %12 = tpu.matmul %10, %11, %cst_8 {dimension_numbers = #tpu.dot_dimension_numbers<[1], [0], [0], [1], [0, 0, 1, 1], [], []>} : vector<32x256xbf16>, vector<256x384xbf16>, vector<32x384xf32> -> vector<32x384xf32>
    %13 = vector.extract_strided_slice %6 {offsets = [0, 256], sizes = [32, 256], strides = [1, 1]} : vector<32x640xf32> to vector<32x256xf32>
    %14 = vector.extract_strided_slice %12 {offsets = [0, 0], sizes = [32, 256], strides = [1, 1]} : vector<32x384xf32> to vector<32x256xf32>
    %15 = arith.addf %13, %14 : vector<32x256xf32>
    %cst_9 = arith.constant 0.000000e+00 : f32
    %16 = vector.broadcast %cst_9 : f32 to vector<32x256xf32>
    %17 = arith.maximumf %15, %16 : vector<32x256xf32>
    %18 = arith.truncf %17 : vector<32x256xf32> to vector<32x256xbf16>
    %19 = vector.extract_strided_slice %6 {offsets = [0, 512], sizes = [32, 128], strides = [1, 1]} : vector<32x640xf32> to vector<32x128xf32>
    %20 = vector.extract_strided_slice %12 {offsets = [0, 256], sizes = [32, 128], strides = [1, 1]} : vector<32x384xf32> to vector<32x128xf32>
    %21 = arith.addf %19, %20 : vector<32x128xf32>
    %c0_10 = arith.constant 0 : index
    %c0_11 = arith.constant 0 : index
    %22 = vector.load %arg4[%c0_10, %c0_11] : memref<256x128xbf16, #tpu.memory_space<vmem>>, vector<256x128xbf16>
    %cst_12 = arith.constant dense<0.000000e+00> : vector<32x128xf32>
    %23 = tpu.matmul %18, %22, %cst_12 {dimension_numbers = #tpu.dot_dimension_numbers<[1], [0], [0], [1], [0, 0, 1, 1], [], []>} : vector<32x256xbf16>, vector<256x128xbf16>, vector<32x128xf32> -> vector<32x128xf32>
    %24 = arith.addf %21, %23 : vector<32x128xf32>
    %cst_13 = arith.constant dense<0xFF800000> : vector<32xf32>
    %25 = vector.multi_reduction <maximumf>, %24, %cst_13 [1] : vector<32x128xf32> to vector<32xf32>
    %26 = vector.shape_cast %25 : vector<32xf32> to vector<32x1xf32>
    %27 = vector.broadcast %26 : vector<32x1xf32> to vector<32x128xf32>
    %28 = arith.subf %24, %27 : vector<32x128xf32>
    %29 = math.exp %28 : vector<32x128xf32>
    %cst_14 = arith.constant dense<0.000000e+00> : vector<32xf32>
    %30 = vector.multi_reduction <add>, %29, %cst_14 [1] : vector<32x128xf32> to vector<32xf32>
    %31 = vector.shape_cast %30 : vector<32xf32> to vector<32x1xf32>
    %32 = vector.broadcast %31 : vector<32x1xf32> to vector<32x128xf32>
    %33 = arith.divf %29, %32 : vector<32x128xf32>
    %34 = vector.extract_strided_slice %33 {offsets = [0, 0], sizes = [32, 8], strides = [1, 1]} : vector<32x128xf32> to vector<32x8xf32>
    %c0_15 = arith.constant 0 : index
    %c0_16 = arith.constant 0 : index
    %35 = vector.load %arg6[%c0_15, %c0_16] : memref<32x8xf32, #tpu.memory_space<vmem>>, vector<32x8xf32>
    tpu.vector_store %arg6[%c0_15, %c0_16], %34 {strides = array<i32>} : memref<32x8xf32, #tpu.memory_space<vmem>>, vector<32x8xf32>,
    return
  }
  func.func @transform_0(%arg0: i32) -> (i32, i32) {
    %c0_i32 = arith.constant 0 : i32
    %c0_i32_0 = arith.constant 0 : i32
    return %arg0, %c0_i32 : i32, i32
  }
  func.func @transform_1(%arg0: i32) -> (i32, i32) {
    %c0_i32 = arith.constant 0 : i32
    %c0_i32_0 = arith.constant 0 : i32
    %c0_i32_1 = arith.constant 0 : i32
    return %c0_i32, %c0_i32_0 : i32, i32
  }
  func.func @transform_2(%arg0: i32) -> (i32, i32) {
    %c0_i32 = arith.constant 0 : i32
    %c0_i32_0 = arith.constant 0 : i32
    %c0_i32_1 = arith.constant 0 : i32
    return %c0_i32, %c0_i32_0 : i32, i32
  }
  func.func @transform_3(%arg0: i32) -> (i32, i32) {
    %c0_i32 = arith.constant 0 : i32
    %c0_i32_0 = arith.constant 0 : i32
    %c0_i32_1 = arith.constant 0 : i32
    return %c0_i32, %c0_i32_0 : i32, i32
  }
  func.func @transform_4(%arg0: i32) -> (i32, i32) {
    %c0_i32 = arith.constant 0 : i32
    %c0_i32_0 = arith.constant 0 : i32
    %c0_i32_1 = arith.constant 0 : i32
    return %c0_i32, %c0_i32_0 : i32, i32
  }
  func.func @transform_5(%arg0: i32) -> (i32, i32) {
    %c0_i32 = arith.constant 0 : i32
    %c0_i32_0 = arith.constant 0 : i32
    return %arg0, %c0_i32 : i32, i32
  }
}

</mosaic_0001>

<bundles_post_ra>
// kernel: net_forward.1
= control target key start
LH: loop header
LB: loop body
LE: loop exit
PB: predicated region body
PF: predicated region fallthrough
CT: control target
= control target key end

     0   :  { %10 = vsyncpa [#allocation3], 0  ;;  %s1884_s0 = inlined_call_operand.vmem [shape: f32[64,29], index: 0, kind: input, shape index: {}]   ;;  %s1885_s1 = inlined_call_operand.vmem [shape: bf16[29,640], index: 1, kind: input, shape index: {}]   ;;  %s1886_s2 = inlined_call_operand.hbm [shape: bf16[256,384], index: 2, kind: input, shape index: {}]   ;;  %s1887_s3 = inlined_call_operand.hbm [shape: bf16[256,128], index: 3, kind: input, shape index: {}]   ;;  %s1888_s4 = inlined_call_operand.vmem [shape: f32[1,640], index: 4, kind: input, shape index: {}]   ;;  %s1889_s5 = inlined_call_operand.vmem [shape: f32[64,8], index: 5, kind: output, shape index: {}]  }
   0x1   :  { %11 = vsyncpa [#allocation5], 0  ;;  %s1728_s18 = smov 0  }
   0x2 LB: > { %s1690_s19 = smov [#allocation2]   ;;  %s1290_s21 = sadd.s32 4294967295, %s1688_s18   ;;  %s1688_s18 = sphi %s1728_s18, %s17_s18  }
   0x3   : > { %s173_s20 = sshll.u32 %s1690_s19, 4  ;;  %p1292_p0 = scmp.ge.s32.totalorder %s1688_s18, 1  ;;  %s174_s20 = int_to_ptr.vmem [resolvable:$true] %s173_s20 }
   0x4   : > { %p158_p1 = scmp.lt.s32.totalorder %s1688_s18, 3  ;;  %p1742_p3 = scmp.eq.s32.totalorder %s1290_s21, 0 }
   0x5   : > { %s1691_s24 = smov [#allocation4]   ;;  %s1618_s29 = scalar_lea.hbm %s1886_s2, 6144 }
   0x6   : > { %p1736_p2 = pnand %p1292_p0, %p158_p1  ;;  %s186_s25 = sshll.u32 %s1691_s24, 4  ;;  %s1754_s25 = int_to_ptr.vmem [resolvable:$true] %s186_s25 }
   0x7   : > { %s1894_s23 = scalar_select %p1742_p3, 1, 0 }
   0x8   : > { %s1893_s22 = scalar_select %p1736_p2, 1, 0 }
   0x9   : > { %p1481_p4 = pneg %p1736_p2  ;;  %p1619_p6 = scmp.ne.s32.totalorder %s1886_s2, %s1618_s29 }
   0xa   : > { %p1625_p10 = scmp.lt.u32.totalorder %s1618_s29, %s1886_s2 }
   0xb   : > { %p1750_p5 = pnand %p1742_p3, %p1481_p4 }
   0xd   : > { %p1620_p7 = pneg %p1750_p5 }
   0xf   : > { %p1621_p8 = pnand %p1620_p7, %p1619_p6 }
  0x11   : > { %p1622_p9 = pneg %p1621_p8 }
  0x13   : > { %p1627_p11 = pnand %p1625_p10, %p1622_p9 }
  0x15   : > { %1630 = shalt.err (!%p1627_p11)
}
  0x16   : > { %s1631_s9 = scalar_lea.vmem %s174_s20, 6144  ;;  %p1639_p1 = scmp.lt.s32.totalorder %s174_s20, %s174_s20 }
  0x17   : > { %p1632_p12 = scmp.ne.s32.totalorder %s174_s20, %s1631_s9  ;;  %p1640_p4 = scmp.lt.s32.totalorder %s1631_s9, %s1631_s9 }
  0x19   : > { %p1634_p13 = pnand %p1632_p12, %p1620_p7  ;;  %p1641_p3 = por %p1640_p4, %p1639_p1 }
  0x1b   : > { %p1635_p0 = pneg %p1634_p13 }
  0x1d   : > { %p1642_p2 = pnand %p1641_p3, %p1635_p0 }
  0x1f   : > { %1645 = shalt.err (!%p1642_p2)
}
  0x20   : > { %s1692_s10 = smov 192   ;;  %s1693_s11 = smov 12  }
  0x21   : > { %1484 = dma.hbm_to_vmem [thread:$0]  (!%p1750_p5), %s1886_s2, 6144, %s174_s20, [#allocation3], %s1692_s10, %s1692_s10, %s1693_s11  }
  0x22   : > { %s1646_s16 = scalar_lea.hbm %s1887_s3, 2048 }
  0x23   : > { %p1647_p6 = scmp.ne.s32.totalorder %s1887_s3, %s1646_s16  ;;  %p1653_p8 = scmp.lt.u32.totalorder %s1646_s16, %s1887_s3 }
  0x25   : > { %p1649_p2 = pnand %p1647_p6, %p1620_p7 }
  0x27   : > { %p1650_p3 = pneg %p1649_p2 }
  0x29   : > { %p1655_p9 = pnand %p1653_p8, %p1650_p3 }
  0x2b   : > { %1658 = shalt.err (!%p1655_p9)
}
  0x2c   : > { %s1659_s20 = scalar_lea.vmem %s1754_s25, 2048  ;;  %p1667_p13 = scmp.lt.s32.totalorder %s1754_s25, %s1754_s25 }
  0x2d   : > { %p1660_p10 = scmp.ne.s32.totalorder %s1754_s25, %s1659_s20  ;;  %p1668_p0 = scmp.lt.s32.totalorder %s1659_s20, %s1659_s20 }
  0x2f   : > { %p1662_p11 = pnand %p1660_p10, %p1620_p7  ;;  %p1669_p1 = por %p1668_p0, %p1667_p13 }
  0x31   : > { %p1663_p12 = pneg %p1662_p11 }
  0x33   : > { %p1670_p4 = pnand %p1669_p1, %p1663_p12 }
  0x35   : > { %1673 = shalt.err (!%p1670_p4)
}
  0x36   : > { %s1694_s28 = smov 64   ;;  %s1695_s29 = smov 4  }
  0x37   : > { %1487 = dma.hbm_to_vmem [thread:$0]  (!%p1750_p5), %s1887_s3, 2048, %s1754_s25, [#allocation5], %s1694_s28, %s1694_s28, %s1695_s29  }
  0x38   : > { %p1896_p6 = scmp.ne.s32.totalorder %s1893_s22, 0 }
  0x39   : > { %p1897_p7 = scmp.ne.s32.totalorder (!%p1896_p6), %s1894_s23, 0 }
  0x3a   : > { %214 = sbr.rel (%p1896_p6) target bundleno = 1064 (0x428), region = 40 }
  0x41   : > { %1679 = dma.done.wait (%p1897_p7), [#allocation3], 6144  }
  0x42   : > { %1681 = vsyncadd (%p1897_p7), [#allocation3], 4294961152 }
  0x43   : > { %1683 = dma.done.wait (%p1897_p7), [#allocation5], 2048  }
  0x44   : > { %1685 = vsyncadd (%p1897_p7), [#allocation5], 4294965248  ;;  %v1696_v0 = vmov 0   ;;  %s1299_s25 = sshll.u32 %s1290_s21, 2  ;;  %vm358_vm0 = vcmask 1045504   ;;  %vm359_vm1 = vcmask 1046528  }
  0x45   : > { %409 = vmatprep.mubr.bf16.mxu0 %v1696_v0  ;;  %419 = vmatprep.mubr.bf16.mxu1 %v1696_v0  ;;  %p247_p5 = scmp.lt.s32.totalorder %s1299_s25, 7  ;;  %v1697_v1 = vmov 65535   ;;  %v1508_v3 = vld [vmem:[%s1885_s1 + $0x4] ss:$20 sps:$4 sm:$0xff]   ;;  %v1510_v4 = vld [vmem:[%s1885_s1] ss:$20 sps:$4 sm:$0xff]  }
  0x46   : > { %v360_v2 = vsel %vm358_vm0, 4294967295, %v1697_v1  ;;  %377 = vmatprep.subr.bf16.mxu0 %v1508_v3  ;;  %v1511_v6 = vld [vmem:[%s1885_s1 + $0x2c] ss:$20 sps:$4 sm:$0x7f]   ;;  %1453 = vmatprep.subr.bf16.mxu1 %v1508_v3  ;;  %vm351_vm2 = vcmask 236544   ;;  %vm1207_vm3 = vcmask 64512  }
  0x47   : > { %s1899_s25 = smov (!%p247_p5, %s1299_s25), 7  ;;  %v361_v5 = vsel %vm359_vm1, %v360_v2, 0  ;;  %v1513_v7 = vld [vmem:[%s1885_s1 + $0x28] ss:$20 sps:$4 sm:$0x7f]   ;;  %378 = vmatpush1.bf16.msra.mxu0 %v1510_v4  ;;  %1455 = vmatpush1.bf16.msra.mxu1 %v1510_v4 }
  0x48   : > { %s1300_s22 = sshll.u32 %s1899_s25, 3  ;;  %v366_v11 = vand.u32 %v1511_v6, %v361_v5  ;;  %v363_v12 = vand.u32 %v1513_v7, %v361_v5  ;;  %v1516_v14 = vld [vmem:[%s1885_s1 + $0xc] ss:$20 sps:$4 sm:$0xff]   ;;  %v1517_v17 = vld [vmem:[%s1885_s1 + $0x30] ss:$20 sps:$4 sm:$0x7f]  }
  0x49   : > { %s250_s21 = scalar_lea.vmem %s1884_s0, %s1300_s22  ;;  %v1514_v18 = vld [vmem:[%s1885_s1 + $0x8] ss:$20 sps:$4 sm:$0xff]   ;;  %v369_v21 = vand.u32 %v1517_v17, %v361_v5  ;;  %v1522_v22 = vld [vmem:[#allocation2 + $0x4] ss:$12 sps:$4 sm:$0xff]   ;;  %v1520_v23 = vld [vmem:[#allocation2] ss:$12 sps:$4 sm:$0xff]   ;;  %s256_s9 = scalar_lea.vmem %s1889_s5, %s1300_s22 }
  0x4a   : > { %v259_v8 = vld [vmem:[%s250_s21] sm:$0xff]  ;;  %v260_v9 = vld [vmem:[%s250_s21 + $0x8] sm:$0xff]  ;;  %v261_v10 = vld [vmem:[%s250_s21 + $0x10] sm:$0xff]  ;;  %379 = vmatprep.subr.bf16.mxu0 %v366_v11  ;;  %1454 = vmatprep.subr.bf16.mxu1 %v366_v11 }
  0x4b   : > { %v262_v13 = vld [vmem:[%s250_s21 + $0x18] sm:$0xff]  ;;  %v263_v15 = vpack.c.bf16 %v260_v9, %v259_v8  ;;  %380 = vmatpush1.bf16.msra.mxu0 %v363_v12  ;;  %1456 = vmatpush1.bf16.msra.mxu1 %v363_v12  ;;  %v1519_v19 = vld [vmem:[%s1885_s1 + $0x34] ss:$20 sps:$4 sm:$0x7f]   ;;  %v1538_v24 = vld [vmem:[%s1885_s1 + $0x10] ss:$20 sps:$4 sm:$0xff]  }
  0x4c   : > { %v264_v16 = vpack.c.bf16 %v262_v13, %v261_v10  ;;  %430 = vmatprep.subr.bf16.mxu1 %v1516_v14  ;;  %v372_v20 = vand.u32 %v1519_v19, %v361_v5  ;;  %v1525_v25 = vld [vmem:[#allocation2 + $0x1c] ss:$12 sps:$4 sm:$0xff]   ;;  %1445 = vmatprep.subr.bf16.mxu0 %v1538_v24  ;;  %v1542_v26 = vld [vmem:[%s1885_s1 + $0x38] ss:$20 sps:$4 sm:$0x7f]   ;;  %v1586_v9 = vld [vmem:[#allocation4 + $0x40] sm:$0xff]   ;;  %v279_v10 = vlaneseq }
  0x4d   : > { %v1523_v27 = vld [vmem:[#allocation2 + $0x18] ss:$12 sps:$4 sm:$0xff]   ;;  %v1528_v28 = vld [vmem:[#allocation2 + $0x34] ss:$12 sps:$4 sm:$0xff]   ;;  %v375_v29 = vand.u32 %v1542_v26, %v361_v5  ;;  %v1526_v31 = vld [vmem:[#allocation2 + $0x30] ss:$12 sps:$4 sm:$0xff]  }
  0x4e   : > { %1313 = vmatmul.mubr.msk.bf16.vlgmr.msra.gmra.mrb[0].mxu0 %vm351_vm2, %v263_v15  ;;  %1314 = vmatmul.mubr.msk.bf16.vlgmr.msra.gmra.mrb[0].mxu1 %vm351_vm2, %v264_v16  ;;  %v1549_v30 = vld [vmem:[#allocation2 + $0xc8] ss:$12 sps:$4 sm:$0xff]   ;;  %v1531_v33 = vld [vmem:[#allocation2 + $0x4c] ss:$12 sps:$4 sm:$0xff]   ;;  %v1534_v36 = vld [vmem:[#allocation2 + $0x64] ss:$12 sps:$4 sm:$0xff]  }
  0x4f   : > { %431 = vmatpush1.bf16.msra.mxu1 %v1514_v18  ;;  %462 = vmatprep.mubr.bf16.mxu1 %v1696_v0  ;;  %v1550_v32 = vld [vmem:[#allocation2 + $0x8] ss:$12 sps:$4 sm:$0xff]   ;;  %v1554_v34 = vld [vmem:[#allocation2 + $0xe0] ss:$12 sps:$4 sm:$0xff]   ;;  %v1559_v38 = vld [vmem:[#allocation2 + $0xf8] ss:$12 sps:$4 sm:$0xff]  }
  0x50   : > { %432 = vmatprep.subr.bf16.mxu1 %v372_v20  ;;  %1449 = vmatprep.mubr.msk.bf16.mxu0 %vm351_vm2, %v263_v15  ;;  %v1529_v35 = vld [vmem:[#allocation2 + $0x48] ss:$12 sps:$4 sm:$0xff]   ;;  %v1555_v37 = vld [vmem:[#allocation2 + $0x20] ss:$12 sps:$4 sm:$0xff]   ;;  %v1560_v41 = vld [vmem:[#allocation2 + $0x38] ss:$12 sps:$4 sm:$0xff]  }
  0x51   : > { %1446 = vmatpush3.bf16.msra.mxu0 %v1538_v24  ;;  %v1532_v39 = vld [vmem:[#allocation2 + $0x60] ss:$12 sps:$4 sm:$0xff]   ;;  %v1537_v40 = vld [vmem:[#allocation2 + $0x7c] ss:$12 sps:$4 sm:$0xff]   ;;  %v1535_v43 = vld [vmem:[#allocation2 + $0x78] ss:$12 sps:$4 sm:$0xff]  }
  0x52   : > { %1447 = vmatprep.subr.bf16.mxu0 %v375_v29  ;;  %v1564_v42 = vld [vmem:[#allocation2 + $0x110] ss:$12 sps:$4 sm:$0xff]   ;;  %v1541_v44 = vld [vmem:[#allocation2 + $0x94] ss:$12 sps:$4 sm:$0xff]   ;;  %v1545_v48 = vld [vmem:[#allocation2 + $0xac] ss:$12 sps:$4 sm:$0xff]  }
  0x53   : > { %433 = vmatpush1.bf16.msra.mxu1 %v369_v21  ;;  %v1565_v45 = vld [vmem:[#allocation2 + $0x50] ss:$12 sps:$4 sm:$0xff]   ;;  %v1569_v46 = vld [vmem:[#allocation2 + $0x128] ss:$12 sps:$4 sm:$0xff]   ;;  %v1574_v50 = vld [vmem:[#allocation2 + $0x140] ss:$12 sps:$4 sm:$0xff]  }
  0x54   : > { %864 = vmatprep.subr.bf16.mxu1 %v1522_v22  ;;  %v1539_v47 = vld [vmem:[#allocation2 + $0x90] ss:$12 sps:$4 sm:$0xff]   ;;  %v1570_v49 = vld [vmem:[#allocation2 + $0x68] ss:$12 sps:$4 sm:$0xff]   ;;  %v1546_v53 = vld [vmem:[#allocation2 + $0xc0] ss:$12 sps:$4 sm:$0xff]  }
  0x55   : > { %1448 = vmatpush3.bf16.msra.mxu0 %v375_v29  ;;  %v1543_v51 = vld [vmem:[#allocation2 + $0xa8] ss:$12 sps:$4 sm:$0xff]   ;;  %v1548_v52 = vld [vmem:[#allocation2 + $0xc4] ss:$12 sps:$4 sm:$0xff]   ;;  %v1563_v58 = vld [vmem:[#allocation2 + $0x10c] ss:$12 sps:$4 sm:$0xff]  }
  0x56   : > { %1315 = vmatmul.mubr.msk.bf16.vlgmr.msra.gmra.mrb[4].mxu1 %vm351_vm2, %v263_v15  ;;  %1389 = vmatprep.subr.bf16.mxu0 %v1549_v30  ;;  %v1553_v54 = vld [vmem:[#allocation2 + $0xdc] ss:$12 sps:$4 sm:$0xff]   ;;  %v1551_v55 = vld [vmem:[#allocation2 + $0xd8] ss:$12 sps:$4 sm:$0xff]   ;;  %v1558_v56 = vld [vmem:[#allocation2 + $0xf4] ss:$12 sps:$4 sm:$0xff]  }
  0x57   : > { %865 = vmatpush1.bf16.msra.mxu1 %v1520_v23  ;;  %472 = vmatprep.mubr.bf16.mxu1 %v1696_v0  ;;  %v1556_v57 = vld [vmem:[#allocation2 + $0xf0] ss:$12 sps:$4 sm:$0xff]   ;;  %v1561_v59 = vld [vmem:[#allocation2 + $0x108] ss:$12 sps:$4 sm:$0xff]   ;;  %v1566_v61 = vld [vmem:[#allocation2 + $0x120] ss:$12 sps:$4 sm:$0xff]  }
  0x58   : > { %866 = vmatprep.subr.bf16.mxu1 %v1525_v25  ;;  %1450 = vmatmul.mubr.msk.bf16.vlgmr.msra.gmra.mrb[4].mxu0 %vm351_vm2, %v264_v16  ;;  %v1568_v60 = vld [vmem:[#allocation2 + $0x124] ss:$12 sps:$4 sm:$0xff]   ;;  %v1573_v62 = vld [vmem:[#allocation2 + $0x13c] ss:$12 sps:$4 sm:$0xff]   ;;  %v1575_v0 = vld [vmem:[#allocation2 + $0x80] ss:$12 sps:$4 sm:$0xff]  }
  0x59   : > { %1390 = vmatpush3.bf16.msra.mxu0 %v1550_v32  ;;  %v1571_v63 = vld [vmem:[#allocation2 + $0x138] ss:$12 sps:$4 sm:$0xff]   ;;  %v1578_v1 = vld [vmem:[#allocation2 + $0x154] ss:$12 sps:$4 sm:$0xff]   ;;  %v1576_v3 = vld [vmem:[#allocation2 + $0x150] ss:$12 sps:$4 sm:$0xff]  }
  0x5a   : > { %1391 = vmatprep.subr.bf16.mxu0 %v1554_v34  ;;  %v1579_v2 = vld [vmem:[#allocation2 + $0x158] ss:$12 sps:$4 sm:$0xff]   ;;  %v1584_v6 = vld [vmem:[#allocation2 + $0x170] ss:$12 sps:$4 sm:$0xff]   ;;  %v1581_v7 = vld [vmem:[#allocation2 + $0x168] ss:$12 sps:$4 sm:$0xff]  }
  0x5b   : > { %867 = vmatpush1.bf16.msra.mxu1 %v1523_v27  ;;  %v1580_v4 = vld [vmem:[#allocation2 + $0x98] ss:$12 sps:$4 sm:$0xff]   ;;  %v1585_v8 = vld [vmem:[#allocation2 + $0xb0] ss:$12 sps:$4 sm:$0xff]   ;;  %v1859_v11 = vshrl.u32 %v279_v10, 7 }
  0x5c   : > { %868 = vmatprep.subr.bf16.mxu1 %v1528_v28  ;;  %v1583_v5 = vld [vmem:[#allocation2 + $0x16c] ss:$12 sps:$4 sm:$0xff]   ;;  %v1865_v13 = vld [vmem:[%s1888_s4] sm:$0x1f] }
  0x5d   : > { %1392 = vmatpush3.bf16.msra.mxu0 %v1555_v37  ;;  %v281_v12 = vsub.s32 0, %v1859_v11  ;;  %v285_v14 = vsub.s32 1, %v1859_v11 }
  0x5e   : > { %1316 = vmatmul.mubr.msk.bf16.gmra.mrb[8].mxu1 %vm351_vm2, %v264_v16  ;;  %1393 = vmatprep.subr.bf16.mxu0 %v1559_v38 }
  0x5f   : > { %869 = vmatpush1.bf16.msra.mxu1 %v1526_v31  ;;  %v282_v15 = vrot.slane %v1865_v13, %v281_v12  ;;  %v286_v16 = vrot.slane %v1865_v13, %v285_v14 }
  0x60   : > { %870 = vmatprep.subr.bf16.mxu1 %v1531_v33 }
  0x61   : > { %1394 = vmatpush3.bf16.msra.mxu0 %v1560_v41 }
  0x62   : > { %1395 = vmatprep.subr.bf16.mxu0 %v1564_v42 }
  0x63   : > { %871 = vmatpush1.bf16.msra.mxu1 %v1529_v35 }
  0x64   : > { %872 = vmatprep.subr.bf16.mxu1 %v1534_v36 }
  0x65   : > { %1396 = vmatpush3.bf16.msra.mxu0 %v1565_v45  ;;  %v1587_v45 = vld [vmem:[#allocation4] sm:$0xff]  }
  0x66   : > { %1397 = vmatprep.subr.bf16.mxu0 %v1569_v46  ;;  %v1588_v46 = vld [vmem:[#allocation4 + $0x48] sm:$0xff]  }
  0x67   : > { %873 = vmatpush1.bf16.msra.mxu1 %v1532_v39 }
  0x68   : > { %874 = vmatprep.subr.bf16.mxu1 %v1537_v40 }
  0x69   : > { %1398 = vmatpush3.bf16.msra.mxu0 %v1570_v49 }
  0x6a   : > { %1399 = vmatprep.subr.bf16.mxu0 %v1574_v50  ;;  %v1591_v50 = vld [vmem:[#allocation4 + $0x10] sm:$0xff]  }
  0x6b   : > { %875 = vmatpush1.bf16.msra.mxu1 %v1535_v43 }
  0x6c   : > { %876 = vmatprep.subr.bf16.mxu1 %v1541_v44 }
  0x6d   : > { %1400 = vmatpush3.bf16.msra.mxu0 %v1575_v0  ;;  %v297_v0 = vsub.s32 4, %v1859_v11 }
  0x6e   : > { %1401 = vmatprep.subr.bf16.mxu0 %v1579_v2  ;;  %v293_v2 = vsub.s32 3, %v1859_v11 }
  0x6f   : > { %877 = vmatpush1.bf16.msra.mxu1 %v1539_v47  ;;  %v1589_v47 = vld [vmem:[#allocation4 + $0x8] sm:$0xff]  }
  0x70   : > { %878 = vmatprep.subr.bf16.mxu1 %v1545_v48  ;;  %v1590_v48 = vld [vmem:[#allocation4 + $0x50] sm:$0xff]  }
  0x71   : > { %1402 = vmatpush3.bf16.msra.mxu0 %v1580_v4 }
  0x72   : > { %1403 = vmatprep.subr.bf16.mxu0 %v1584_v6 }
  0x73   : > { %879 = vmatpush1.bf16.msra.mxu1 %v1543_v51 }
  0x74   : > { %880 = vmatprep.subr.bf16.mxu1 %v1548_v52  ;;  %v1592_v52 = vld [vmem:[#allocation4 + $0x58] sm:$0xff]  }
  0x75   : > { %1404 = vmatpush3.bf16.msra.mxu0 %v1585_v8 }
  0x76   : > { %1417 = vmatprep.subr.bf16.mxu0 %v1586_v9 }
  0x77   : > { %881 = vmatpush1.bf16.msra.mxu1 %v1546_v53 }
  0x78   : > { %882 = vmatprep.subr.bf16.mxu1 %v1553_v54 }
  0x7b   : > { %883 = vmatpush1.bf16.msra.mxu1 %v1551_v55  ;;  %v1593_v55 = vld [vmem:[#allocation4 + $0x18] sm:$0xff]  }
  0x7c   : > { %884 = vmatprep.subr.bf16.mxu1 %v1558_v56  ;;  %v1594_v56 = vld [vmem:[#allocation4 + $0x60] sm:$0xff]  }
  0x7f   : > { %885 = vmatpush1.bf16.msra.mxu1 %v1556_v57  ;;  %v1595_v57 = vld [vmem:[#allocation4 + $0x20] sm:$0xff]  }
  0x80   : > { %886 = vmatprep.subr.bf16.mxu1 %v1563_v58  ;;  %v1596_v58 = vld [vmem:[#allocation4 + $0x68] sm:$0xff]  }
  0x83   : > { %887 = vmatpush1.bf16.msra.mxu1 %v1561_v59  ;;  %v1597_v59 = vld [vmem:[#allocation4 + $0x28] sm:$0xff]  }
  0x84   : > { %888 = vmatprep.subr.bf16.mxu1 %v1568_v60  ;;  %v1598_v60 = vld [vmem:[#allocation4 + $0x70] sm:$0xff]  }
  0x87   : > { %889 = vmatpush1.bf16.msra.mxu1 %v1566_v61  ;;  %v1599_v61 = vld [vmem:[#allocation4 + $0x30] sm:$0xff]  }
  0x88   : > { %890 = vmatprep.subr.bf16.mxu1 %v1573_v62  ;;  %v1600_v62 = vld [vmem:[#allocation4 + $0x78] sm:$0xff]  }
  0x8b   : > { %891 = vmatpush1.bf16.msra.mxu1 %v1571_v63  ;;  %v1601_v63 = vld [vmem:[#allocation4 + $0x38] sm:$0xff]  }
  0x8c   : > { %892 = vmatprep.subr.bf16.mxu1 %v1578_v1  ;;  %v289_v1 = vsub.s32 2, %v1859_v11 }
  0x8e   : > { %v290_v4 = vrot.slane %v1865_v13, %v289_v1 }
  0x8f   : > { %893 = vmatpush1.bf16.msra.mxu1 %v1576_v3  ;;  %v298_v3 = vrot.slane %v1865_v13, %v297_v0 }
  0x90   : > { %894 = vmatprep.subr.bf16.mxu1 %v1583_v5  ;;  %v294_v5 = vrot.slane %v1865_v13, %v293_v2 }
  0x93   : > { %895 = vmatpush1.bf16.msra.mxu1 %v1581_v7 }
 0x121   : > { %v411_v17 = vpop.f32.mrb[0].mxu0  ;;  %v421_v18 = vpop.f32.mrb[0].mxu1 }
 0x122   : > { %v412_v19 = vadd.f32 %v411_v17, %v282_v15  ;;  %v413_v20 = vpop.f32.mrb[1].mxu0  ;;  %v422_v21 = vadd.f32 %v421_v18, %v282_v15  ;;  %v423_v22 = vpop.f32.mrb[1].mxu1 }
 0x123   : > { %v414_v23 = vadd.f32 %v413_v20, %v286_v16  ;;  %v415_v24 = vpop.f32.mrb[2].mxu0  ;;  %v424_v25 = vadd.f32 %v423_v22, %v286_v16  ;;  %v425_v26 = vpop.f32.mrb[2].mxu1 }
 0x124   : > { %v416_v27 = vadd.f32 %v415_v24, %v282_v15  ;;  %v417_v28 = vpop.f32.mrb[3].mxu0  ;;  %v536_v29 = vmax.f32 %v422_v21, 0.0  ;;  %v426_v30 = vadd.f32 %v425_v26, %v282_v15  ;;  %v427_v31 = vpop.f32.mrb[3].mxu1  ;;  %v532_v35 = vmax.f32 %v412_v19, 0.0 }
 0x125   : > { %v418_v32 = vadd.f32 %v417_v28, %v286_v16  ;;  %v537_v33 = vmax.f32 %v424_v25, 0.0  ;;  %v428_v34 = vadd.f32 %v427_v31, %v286_v16  ;;  %v533_v38 = vmax.f32 %v414_v23, 0.0 }
 0x126   : > { %v534_v36 = vmax.f32 %v416_v27, 0.0  ;;  %v538_v37 = vmax.f32 %v426_v30, 0.0 }
 0x127   : > { %v535_v39 = vmax.f32 %v418_v32, 0.0  ;;  %v539_v40 = vmax.f32 %v428_v34, 0.0 }
 0x128   : > { %v540_v41 = vpack.c.bf16 %v534_v36, %v532_v35  ;;  %v542_v42 = vpack.c.bf16 %v538_v37, %v536_v29 }
 0x129   : > { %v541_v43 = vpack.c.bf16 %v535_v39, %v533_v38  ;;  %v543_v44 = vpack.c.bf16 %v539_v40, %v537_v33 }
 0x12b   : > { %896 = vmatprep.mubr.bf16.mxu1 %v541_v43  ;;  %949 = vmatprep.mubr.bf16.mxu0 %v541_v43  ;;  %v1451_v49 = vpop.f32.mrb[4].mxu0 }
 0x12c   : > { %897 = vmatmul.mubr.bf16.vlgmr.msra.gmra.mrb[4].mxu1 %v540_v41  ;;  %950 = vmatmul.mubr.bf16.vlgmr.msra.gmra.mrb[8].mxu0 %v540_v41  ;;  %v517_v51 = vpop.f32.mrb[5].mxu0  ;;  %v526_v29 = vadd.f32 %v1451_v49, %v298_v3 }
 0x12d   : > { %906 = vmatprep.mubr.bf16.mxu1 %v543_v44  ;;  %957 = vmatprep.mubr.bf16.mxu0 %v543_v44  ;;  %v1452_v53 = vpop.f32.mrb[6].mxu0  ;;  %v518_v6 = vadd.f32 %v517_v51, %v298_v3 }
 0x12e   : > { %1418 = vmatpush3.bf16.msra.mxu0 %v1587_v45  ;;  %v520_v54 = vpop.f32.mrb[7].mxu0  ;;  %v529_v36 = vadd.f32 %v1452_v53, %v298_v3 }
 0x12f   : > { %1419 = vmatprep.subr.bf16.mxu0 %v1588_v46  ;;  %v521_v14 = vadd.f32 %v520_v54, %v298_v3 }
 0x132   : > { %1420 = vmatpush3.bf16.msra.mxu0 %v1589_v47 }
 0x133   : > { %1421 = vmatprep.subr.bf16.mxu0 %v1590_v48 }
 0x134   : > { %907 = vmatmul.mubr.bf16.gmra.mrb[8].mxu1 %v542_v42  ;;  %958 = vmatmul.mubr.bf16.gmra.mrb[12].mxu0 %v542_v42 }
 0x136   : > { %1422 = vmatpush3.bf16.msra.mxu0 %v1591_v50 }
 0x137   : > { %1423 = vmatprep.subr.bf16.mxu0 %v1592_v52 }
 0x13a   : > { %1424 = vmatpush3.bf16.msra.mxu0 %v1593_v55 }
 0x13b   : > { %1425 = vmatprep.subr.bf16.mxu0 %v1594_v56 }
 0x13e   : > { %1426 = vmatpush3.bf16.msra.mxu0 %v1595_v57 }
 0x13f   : > { %1427 = vmatprep.subr.bf16.mxu0 %v1596_v58 }
 0x142   : > { %1428 = vmatpush3.bf16.msra.mxu0 %v1597_v59 }
 0x143   : > { %1429 = vmatprep.subr.bf16.mxu0 %v1598_v60 }
 0x146   : > { %1430 = vmatpush3.bf16.msra.mxu0 %v1599_v61 }
 0x147   : > { %1431 = vmatprep.subr.bf16.mxu0 %v1600_v62 }
 0x14a   : > { %1432 = vmatpush3.bf16.msra.mxu0 %v1601_v63 }
 0x1ff   : > { %v898_v7 = vpop.f32.mrb[4].mxu1  ;;  %v1405_v8 = vpop.f32.mrb[8].mxu0 }
 0x200   : > { %v1457_v9 = vadd.f32 %v898_v7, %v290_v4  ;;  %v900_v10 = vpop.f32.mrb[5].mxu1  ;;  %v1406_v12 = vpop.f32.mrb[9].mxu0 }
 0x201   : > { %v1458_v15 = vadd.f32 %v900_v10, %v294_v5  ;;  %v1407_v16 = vadd.f32 %v1406_v12, %v1405_v8  ;;  %v902_v17 = vpop.f32.mrb[6].mxu1  ;;  %v1408_v18 = vpop.f32.mrb[10].mxu0 }
 0x202   : > { %v1459_v19 = vadd.f32 %v902_v17, %v290_v4  ;;  %v904_v20 = vpop.f32.mrb[7].mxu1  ;;  %v1409_v11 = vpop.f32.mrb[11].mxu0  ;;  %v974_v24 = vmax.f32 %v1457_v9, 0.0 }
 0x203   : > { %v986_v21 = vadd.f32 %v1407_v16, %v518_v6  ;;  %v1460_v22 = vadd.f32 %v904_v20, %v294_v5  ;;  %v1410_v23 = vadd.f32 %v1409_v11, %v1408_v18  ;;  %v975_v13 = vmax.f32 %v1458_v15, 0.0 }
 0x204   : > { %v976_v25 = vmax.f32 %v1459_v19, 0.0 }
 0x205   : > { %v977_v26 = vmax.f32 %v1460_v22, 0.0  ;;  %v987_v27 = vadd.f32 %v1410_v23, %v521_v14 }
 0x206   : > { %v982_v28 = vpack.c.bf16 %v976_v25, %v974_v24 }
 0x207   : > { %v983_v30 = vpack.c.bf16 %v977_v26, %v975_v13  ;;  %v908_v31 = vpop.f32.mrb[8].mxu1  ;;  %v1411_v32 = vpop.f32.mrb[12].mxu0 }
 0x208   : > { %v1461_v33 = vadd.f32 %v908_v31, %v290_v4  ;;  %v910_v34 = vpop.f32.mrb[9].mxu1  ;;  %v1412_v35 = vpop.f32.mrb[13].mxu0 }
 0x209   : > { %v1462_v37 = vadd.f32 %v910_v34, %v294_v5  ;;  %v1413_v38 = vadd.f32 %v1412_v35, %v1411_v32  ;;  %v912_v39 = vpop.f32.mrb[10].mxu1  ;;  %v1414_v40 = vpop.f32.mrb[14].mxu0  ;;  %1150 = vmatprep.mubr.bf16.mxu0 %v983_v30 }
 0x20a   : > { %v1463_v41 = vadd.f32 %v912_v39, %v290_v4  ;;  %v914_v42 = vpop.f32.mrb[11].mxu1  ;;  %v1415_v43 = vpop.f32.mrb[15].mxu0  ;;  %1151 = vmatmul.mubr.bf16.vlgmr.msra.gmra.mrb[16].mxu0 %v982_v28  ;;  %v978_v47 = vmax.f32 %v1461_v33, 0.0 }
 0x20b   : > { %v988_v44 = vadd.f32 %v1413_v38, %v526_v29  ;;  %v1464_v45 = vadd.f32 %v914_v42, %v294_v5  ;;  %v1416_v46 = vadd.f32 %v1415_v43, %v1414_v40  ;;  %v979_v49 = vmax.f32 %v1462_v37, 0.0 }
 0x20c   : > { %v980_v48 = vmax.f32 %v1463_v41, 0.0 }
 0x20d   : > { %v981_v50 = vmax.f32 %v1464_v45, 0.0  ;;  %v989_v51 = vadd.f32 %v1416_v46, %v529_v36 }
 0x20e   : > { %v984_v52 = vpack.c.bf16 %v980_v48, %v978_v47 }
 0x20f   : > { %v985_v54 = vpack.c.bf16 %v981_v50, %v979_v49 }
 0x211   : > { %1158 = vmatprep.mubr.bf16.mxu0 %v985_v54 }
 0x212   : > { %1159 = vmatmul.mubr.bf16.gmra.mrb[20].mxu0 %v984_v52 }
 0x2dd   : > { %v1433_v53 = vpop.f32.mrb[16].mxu0 }
 0x2de   : > { %v1434_v55 = vpop.f32.mrb[17].mxu0 }
 0x2df   : > { %v1435_v56 = vadd.f32 %v1434_v55, %v1433_v53  ;;  %v1436_v57 = vpop.f32.mrb[18].mxu0 }
 0x2e0   : > { %v1437_v58 = vpop.f32.mrb[19].mxu0 }
 0x2e1   : > { %v1438_v59 = vadd.f32 %v1437_v58, %v1436_v57  ;;  %v1167_v60 = vadd.f32 %v1435_v56, %v986_v21 }
 0x2e3   : > { %1171 = vmax.xlane.f32.xlu0 %v1167_v60  ;;  %v1168_v61 = vadd.f32 %v1438_v59, %v987_v27 }
 0x2e5   : > { %v1439_v62 = vpop.f32.mrb[20].mxu0 }
 0x2e6   : > { %v1440_v63 = vpop.f32.mrb[21].mxu0 }
 0x2e7   : > { %v1441_v0 = vadd.f32 %v1440_v63, %v1439_v62  ;;  %1173 = vmax.xlane.f32.xlu0 %v1168_v61  ;;  %v1442_v1 = vpop.f32.mrb[22].mxu0 }
 0x2e8   : > { %v1443_v2 = vpop.f32.mrb[23].mxu0 }
 0x2e9   : > { %v1444_v3 = vadd.f32 %v1443_v2, %v1442_v1  ;;  %v1169_v4 = vadd.f32 %v1441_v0, %v988_v44 }
 0x2eb   : > { %1175 = vmax.xlane.f32.xlu1 %v1169_v4  ;;  %v1170_v5 = vadd.f32 %v1444_v3, %v989_v51 }
 0x2ef   : > { %1177 = vmax.xlane.f32.xlu1 %v1170_v5 }
 0x370   : > { %v1172_v6 = vpop.xlane.xlu0 %1171 }
 0x371   : > { %v1179_v7 = vsub.f32 %v1167_v60, %v1172_v6 }
 0x373   : > { %v1183_v8 = vmul.f32 1.442695, %v1179_v7 }
 0x374   : > { %v1174_v9 = vpop.xlane.xlu0 %1173 }
 0x375   : > { %1602 = vpow2.f32 %v1183_v8  ;;  %v1180_v10 = vsub.f32 %v1168_v61, %v1174_v9 }
 0x377   : > { %v1185_v12 = vmul.f32 1.442695, %v1180_v10 }
 0x378   : > { %v1176_v14 = vpop.xlane.xlu1 %1175 }
 0x379   : > { %1604 = vpow2.f32 %v1185_v12  ;;  %v1181_v15 = vsub.f32 %v1169_v4, %v1176_v14 }
 0x37b   : > { %v1187_v16 = vmul.f32 1.442695, %v1181_v15 }
 0x37c   : > { %v1178_v17 = vpop.xlane.xlu1 %1177 }
 0x37d   : > { %1606 = vpow2.f32 %v1187_v16  ;;  %v1182_v18 = vsub.f32 %v1170_v5, %v1178_v17 }
 0x37f   : > { %v1603_v19 = vpop.eup %1602  ;;  %v1189_v20 = vmul.f32 1.442695, %v1182_v18 }
 0x380   : > { %1191 = vadd.xlane.f32.xlu0 %v1603_v19 }
 0x381   : > { %1608 = vpow2.f32 %v1189_v20 }
 0x383   : > { %v1605_v11 = vpop.eup %1604 }
 0x384   : > { %1193 = vadd.xlane.f32.xlu1 %v1605_v11 }
 0x387   : > { %v1607_v21 = vpop.eup %1606 }
 0x388   : > { %1195 = vadd.xlane.f32.xlu0 %v1607_v21 }
 0x38b   : > { %v1609_v22 = vpop.eup %1608 }
 0x38c   : > { %1197 = vadd.xlane.f32.xlu1 %v1609_v22 }
 0x40d   : > { %v1192_v23 = vpop.xlane.xlu0 %1191 }
 0x40e   : > { %1610 = vrcp.f32 %v1192_v23 }
 0x411   : > { %v1194_v24 = vpop.xlane.xlu1 %1193 }
 0x412   : > { %1612 = vrcp.f32 %v1194_v24 }
 0x415   : > { %v1196_v25 = vpop.xlane.xlu0 %1195 }
 0x416   : > { %1614 = vrcp.f32 %v1196_v25 }
 0x418   : > { %v1611_v13 = vpop.eup %1610 }
 0x419   : > { %v1200_v26 = vmul.f32 %v1611_v13, %v1603_v19  ;;  %v1198_v27 = vpop.xlane.xlu1 %1197 }
 0x41a   : > { %1616 = vrcp.f32 %v1198_v27 }
 0x41b   : > { %1208 = vst.msk [vmem:[%s256_s9] sm:$0xff] %vm1207_vm3, %v1200_v26 }
 0x41c   : > { %v1613_v28 = vpop.eup %1612 }
 0x41d   : > { %v1202_v29 = vmul.f32 %v1613_v28, %v1605_v11 }
 0x41f   : > { %1209 = vst.msk [vmem:[%s256_s9 + $0x8] sm:$0xff] %vm1207_vm3, %v1202_v29 }
 0x420   : > { %v1615_v30 = vpop.eup %1614 }
 0x421   : > { %v1204_v31 = vmul.f32 %v1615_v30, %v1607_v21 }
 0x423   : > { %1210 = vst.msk [vmem:[%s256_s9 + $0x10] sm:$0xff] %vm1207_vm3, %v1204_v31 }
 0x424   : > { %v1617_v32 = vpop.eup %1616 }
 0x425   : > { %v1206_v33 = vmul.f32 %v1617_v32, %v1609_v22 }
 0x427   : > { %1211 = vst.msk [vmem:[%s256_s9 + $0x18] sm:$0xff] %vm1207_vm3, %v1206_v33 }
 0x428 PF: > { %s17_s18 = sadd.s32 1, %s1688_s18  }
 0x429   : > { %p14_p2 = scmp.ge.s32.totalorder %s17_s18, 4  }
 0x42b   :  { %16 = sbr.rel (!%p14_p2) target bundleno = 2 (0x2), region = 79 }
 0x432   :  { %1234 = vsyncpa [#allocation3], 1 }
 0x433   :  { %1236 = vsyncpa [#allocation3 + $0x1], 1 }
 0x434   :  { %1237 = vsyncpa [#allocation5], 1 }

</bundles_post_ra>
